<compile_context>
chip_gen: v7x
topology: tpu7x:2x2x1
jax: 0.10.0
libtpu: 0.0.40
codegen_flags: <defaults>
</compile_context>

<pallas_src>
from functools import partial

import numpy as np
import jax
import jax.numpy as jnp
from jax.experimental import pallas as pl
from jax.experimental.pallas import tpu as pltpu


# ---------------------------------------------------------------------------
# Phase 1a: phi[n, c] = mean over the c-th column chunk of z  (one MXU matmul)
# ---------------------------------------------------------------------------
def _phi_kernel(z_ref, s_ref, phi_ref):
    # (tn, F) @ (F, C) -> (tn, C), accumulated in f32 on the MXU.  No explicit
    # upcast of z: preferred_element_type handles bf16 -> f32 accumulation.
    phi_ref[...] = jnp.dot(z_ref[...], s_ref[...],
                           preferred_element_type=jnp.float32)


# ---------------------------------------------------------------------------
# Phase 1b: softmax over nodes + node_weight + argmax mask  ((N, C) sized)
# ---------------------------------------------------------------------------
def _weight_kernel(phi_ref, w_ref, mask_ref, *, n_coms: int):
    phi = phi_ref[...]                                    # (N, C) f32
    # softmax over nodes (axis 0), per community column
    phi = phi - jnp.max(phi, axis=0, keepdims=True)
    e = jnp.exp(phi)
    p = e / jnp.sum(e, axis=0, keepdims=True)
    # node_weight[n, c] = p[n, c] * (total - r[n]); total == n_coms exactly
    # (each softmax column sums to 1), so no cross-vreg reduction is needed.
    r = jnp.sum(p, axis=1, keepdims=True)                 # (N, 1)
    w = p * (float(n_coms) - r)
    w_ref[...] = w
    # argmax mask per node (ties kept, exactly like torch.eq(w, max.repeat))
    mask_ref[...] = (w == jnp.max(w, axis=1, keepdims=True)).astype(jnp.int32)
    # TODO(synk): node_mask_2 (threshold mask) is computed but unused in the
    # original module (node_mask = node_mask_1), so it is omitted here.


# ---------------------------------------------------------------------------
# Phase 2: x_parts[c, tile] = x[tile] * mask_col[c, tile]   (streaming store)
# ---------------------------------------------------------------------------
def _scatter_kernel(x_ref, m_ref, xp_ref):
    # Exactly one multiply + one store per vreg.  The x tile stays resident
    # across the inner community axis (its index_map ignores c); the mask
    # column for community c is selected by the BlockSpec, not in-kernel.
    xp_ref[...] = x_ref[...] * m_ref[...]


def node_part_forward(x, z, n_coms, *, node_tile=512):
    """NodePart forward.  Returns (node_weight, node_mask, x_parts)."""
    N, D = x.shape
    Nz, F = z.shape
    assert Nz == N
    # TODO(synk): torch.tensor_split allows uneven chunks; we require even ones.
    assert F % n_coms == 0, "choose z feature dim divisible by N_coms"
    per = F // n_coms

    # node tile: whole array when small, otherwise 512 rows (multiple of 8)
    tn = N if N <= node_tile else node_tile
    n_tiles = pl.cdiv(N, tn)

    # static (F, C) block-diagonal averaging matrix: chunk mean == z @ S
    S = (jnp.equal(jnp.arange(F)[:, None] // per,
                   jnp.arange(n_coms)[None, :]).astype(z.dtype)) * (1.0 / per)

    # ---- phase 1a: phi (z streamed over node tiles, S resident) -------------
    phi = pl.pallas_call(
        _phi_kernel,
        out_shape=jax.ShapeDtypeStruct((N, n_coms), jnp.float32),
        grid=(n_tiles,),
        in_specs=[
            pl.BlockSpec((tn, F), lambda i: (i, 0)),        # z tile
            pl.BlockSpec((F, n_coms), lambda i: (0, 0)),    # S (stays resident)
        ],
        out_specs=pl.BlockSpec((tn, n_coms), lambda i: (i, 0)),
        compiler_params=pltpu.CompilerParams(
            dimension_semantics=("parallel",),
            vmem_limit_bytes=32 * 1024 * 1024),
    )(z, S)

    # ---- phase 1b: softmax over nodes + weights + mask (tiny, one block) ----
    node_weight, node_mask = pl.pallas_call(
        partial(_weight_kernel, n_coms=n_coms),
        out_shape=(jax.ShapeDtypeStruct((N, n_coms), jnp.float32),
                   jax.ShapeDtypeStruct((N, n_coms), jnp.int32)),
        in_specs=[pl.BlockSpec(memory_space=pltpu.MemorySpace.VMEM)],
        out_specs=(pl.BlockSpec(memory_space=pltpu.MemorySpace.VMEM),
                   pl.BlockSpec(memory_space=pltpu.MemorySpace.VMEM)),
    )(phi)

    # Layout plumbing only (not compute hoisting): present the mask as
    # (C, N, 1) in x's dtype so phase 2's BlockSpec picks community c's column
    # via the grid index and the kernel body is a single multiply + store.
    mask_cn1 = node_mask.astype(x.dtype).T[:, :, None]      # (C, N, 1)

    # ---- phase 2: streaming x_parts writeback (the C*N*D HBM store stream) --
    x_parts = pl.pallas_call(
        _scatter_kernel,
        out_shape=jax.ShapeDtypeStruct((n_coms, N, D), x.dtype),
        grid=(n_tiles, n_coms),                             # c is the inner axis
        in_specs=[
            pl.BlockSpec((tn, D), lambda i, c: (i, 0)),     # x read once per tile
            pl.BlockSpec((None, tn, 1), lambda i, c: (c, i, 0)),
        ],
        out_specs=pl.BlockSpec((None, tn, D), lambda i, c: (c, i, 0)),
        compiler_params=pltpu.CompilerParams(
            dimension_semantics=("parallel", "arbitrary"),
            vmem_limit_bytes=32 * 1024 * 1024),
    )(x, mask_cn1)

    return node_weight, node_mask, x_parts


def _reference_numpy(x, z, n_coms):
    """Faithful numpy translation of the PyTorch forward (eval mode)."""
    N = z.shape[0]
    chunks = np.array_split(z, n_coms, axis=1)
    phi = np.stack([c.mean(axis=1) for c in chunks], axis=1).astype(np.float32)
    phi = phi - phi.max(axis=0, keepdims=True)
    e = np.exp(phi)
    phi = e / e.sum(axis=0, keepdims=True)
    m_count = np.einsum('ij,lm->ijml', phi, phi)
    _m_1 = m_count.sum(axis=2)
    mask_1 = np.triu(np.ones((N, N), dtype=np.float32), k=1)[:, None, :]
    m_1 = (_m_1 * mask_1).sum(axis=2)
    _m_2 = m_count.sum(axis=1)
    m_2 = (_m_2 * mask_1).sum(axis=0).T
    w = m_1 + m_2
    mask = (w == w.max(axis=1, keepdims=True))
    x_parts = np.stack([x * mask[:, c:c + 1].astype(x.dtype) for c in range(n_coms)])
    return w, mask, x_parts


if __name__ == "__main__":
    # Small deterministic example consistent with the module's forward:
    #   N_coms=4 communities, N=8 nodes, D=32 node features,
    #   z has 32 affiliation dims (8 per community).
    N_COMS = 4
    N, D, F = 8, 32, 32

    key = jax.random.PRNGKey(0)
    kx, kz = jax.random.split(key)
    x = jax.random.normal(kx, (N, D), dtype=jnp.float32)
    z = jax.random.normal(kz, (N, F), dtype=jnp.float32)

    node_weight, node_mask, x_parts = jax.block_until_ready(
        node_part_forward(x, z, N_COMS))

    # recover the variable-length indices_list outside the kernel (dynamic shape)
    indices_list = [np.nonzero(np.asarray(node_mask)[:, c])[0] for c in range(N_COMS)]

    # verify against a faithful numpy port of the torch module
    # (node_weight tolerance accounts for the MXU f32 matmul path for the chunk means)
    w_ref, m_ref, xp_ref = _reference_numpy(np.asarray(x), np.asarray(z), N_COMS)
    np.testing.assert_allclose(np.asarray(node_weight), w_ref, rtol=2e-3, atol=1e-3)
    np.testing.assert_array_equal(np.asarray(node_mask).astype(bool), m_ref)
    np.testing.assert_allclose(np.asarray(x_parts), xp_ref, rtol=1e-5, atol=1e-6)

    print("KERNEL_OK")
</pallas_src>

<mosaic_0001>
module attributes {stable_mosaic.version = 11 : i64} {
  func.func @_phi_kernel(%arg0: i32, %arg1: memref<8x32xf32, #tpu.memory_space<vmem>>, %arg2: memref<32x4xf32, #tpu.memory_space<vmem>>, %arg3: memref<8x4xf32, #tpu.memory_space<vmem>>) attributes {dimension_semantics = [#tpu.dimension_semantics<parallel>], iteration_bounds = array<i64: 1>, scalar_prefetch = 0 : i64, scratch_operands = 0 : i64, tpu.core_type = #tpu.core_type<tc>, window_params = [{transform_indices = @transform_0, window_bounds = array<i64: 8, 32>}, {pipeline_mode = #tpu.pipeline_mode<synchronous>, transform_indices = @transform_1, window_bounds = array<i64: 32, 4>}, {transform_indices = @transform_2, window_bounds = array<i64: 8, 4>}]} {
    %c0 = arith.constant 0 : index
    %c0_0 = arith.constant 0 : index
    %0 = vector.load %arg1[%c0, %c0_0] : memref<8x32xf32, #tpu.memory_space<vmem>>, vector<8x32xf32>
    %c0_1 = arith.constant 0 : index
    %c0_2 = arith.constant 0 : index
    %1 = vector.load %arg2[%c0_1, %c0_2] : memref<32x4xf32, #tpu.memory_space<vmem>>, vector<32x4xf32>
    %cst = arith.constant dense<0.000000e+00> : vector<8x4xf32>
    %2 = tpu.matmul %0, %1, %cst {dimension_numbers = #tpu.dot_dimension_numbers<[1], [0], [0], [1], [0, 0, 1, 1], [], []>} : vector<8x32xf32>, vector<32x4xf32>, vector<8x4xf32> -> vector<8x4xf32>
    %c0_3 = arith.constant 0 : index
    %c0_4 = arith.constant 0 : index
    %3 = vector.load %arg3[%c0_3, %c0_4] : memref<8x4xf32, #tpu.memory_space<vmem>>, vector<8x4xf32>
    tpu.vector_store %arg3[%c0_3, %c0_4], %2 {strides = array<i32>} : memref<8x4xf32, #tpu.memory_space<vmem>>, vector<8x4xf32>,
    return
  }
  func.func @transform_0(%arg0: i32) -> (i32, i32) {
    %c0_i32 = arith.constant 0 : i32
    %c0_i32_0 = arith.constant 0 : i32
    return %arg0, %c0_i32 : i32, i32
  }
  func.func @transform_1(%arg0: i32) -> (i32, i32) {
    %c0_i32 = arith.constant 0 : i32
    %c0_i32_0 = arith.constant 0 : i32
    %c0_i32_1 = arith.constant 0 : i32
    return %c0_i32, %c0_i32_0 : i32, i32
  }
  func.func @transform_2(%arg0: i32) -> (i32, i32) {
    %c0_i32 = arith.constant 0 : i32
    %c0_i32_0 = arith.constant 0 : i32
    return %arg0, %c0_i32 : i32, i32
  }
}

</mosaic_0001>

<bundles_post_ra>
// kernel: tpu_custom_call.1
= control target key start
LH: loop header
LB: loop body
LE: loop exit
PB: predicated region body
PF: predicated region fallthrough
CT: control target
= control target key end

     0   :  { %v122_v0 = vmov 0.0|0.0   ;;  %vm123_vm0 = vmmov 0   ;;  %v124_v4 = vmov 0.0   ;;  %vm16_vm1 = vcmask 261120   ;;  %s158_s1 = inlined_call_operand.vmem [shape: f32[32,4], index: 1, kind: input, shape index: {}]   ;;  %s159_s0 = inlined_call_operand.vmem [shape: f32[8,32], index: 0, kind: input, shape index: {}]   ;;  %s160_s2 = inlined_call_operand.vmem [shape: f32[8,4], index: 2, kind: output, shape index: {}]  }
   0x1   :  { %113 = vmatprep.subr.bf16.mxu0 %v122_v0  ;;  %v12_v1 = vld [vmem:[%s158_s1] sm:$0xff]  ;;  %v13_v2 = vld [vmem:[%s158_s1 + $0x8] sm:$0xff]  ;;  %v14_v3 = vld [vmem:[%s158_s1 + $0x10] sm:$0xff]  ;;  %110 = vmatprep.mubr.msk.f32.mxu0 %vm123_vm0, %v124_v4  ;;  %vm90_vm2 = vcmask 31744  }
   0x2   :  { %v114_v5 = vpack.c.bf16 %v13_v2, %v12_v1  ;;  %v15_v6 = vld [vmem:[%s158_s1 + $0x18] sm:$0xff]  ;;  %v11_v8 = vld [vmem:[%s159_s0] sm:$0xff] }
   0x3   :  { %v117_v7 = vpack.c.bf16 %v15_v6, %v14_v3 }
   0x4   :  { %115 = vmatpush3.bf16.msra.mxu0 %v114_v5 }
   0x5   :  { %116 = vmatprep.subr.bf16.mxu0 %v122_v0 }
   0x8   :  { %118 = vmatpush3.bf16.msra.mxu0 %v117_v7 }
   0xb   :  { %111 = vmatmul.mubr.msk.f32.vlgmr.msra.gmra.mrb[0].mxu0 %vm16_vm1, %v11_v8 }
  0xde   :  { %v86_v9 = vpop.f32.mrb[0].mxu0 }
  0xdf   :  { %91 = vst.msk [vmem:[%s160_s2] sm:$0xff] %vm90_vm2, %v86_v9  ;;  %v112_v10 = vpop.f32.mrb[1].mxu0 }

</bundles_post_ra>
